<compile_context>
chip_gen: v7x
topology: tpu7x:2x2x1
jax: 0.10.0
libtpu: 0.0.40
codegen_flags: <defaults>
</compile_context>

<pallas_src>
import jax
import jax.numpy as jnp
import numpy as np
from jax.experimental import pallas as pl
from jax.experimental.pallas import tpu as pltpu

# ---- small, deterministic config (scaled-down TabularGAN defaults) ----
N_UNITS_LATENT = 16      # n_units_latent
N_UNITS_COND = 4         # conditional dimension from ConditionalDatasetSampler
HIDDEN = 32              # generator_n_units_hidden (150 in defaults, small here)
NEG_SLOPE = 0.01         # nn.LeakyReLU default negative_slope

# encoder.activation_layout(discrete='softmax', continuous='none') synthetic example:
ACT_LAYOUT = (("none", 1), ("softmax", 3), ("none", 1), ("softmax", 4))
N_FEATURES = sum(l for _, l in ACT_LAYOUT)          # 9 = encoder.n_features()
HAS_SOFTMAX = any(a == "softmax" for a, _ in ACT_LAYOUT)

D0 = N_UNITS_LATENT + N_UNITS_COND                  # generator input dim = 20
D1 = HIDDEN + D0                                    # after residual layer 1 = 52
D2 = 2 * D1                                         # after residual layer 2 = 104

K_PAD = 128                                         # lane-packed activation width
F_PAD = 128                                         # lane-dense padded output width
assert D2 <= K_PAD and N_FEATURES <= F_PAD


def _round_up(x, m):
    return ((x + m - 1) // m) * m


def _build_head_constants():
    """segmat: (F_PAD, F_PAD) 0/1 matrix, segmat[j,l]=1 iff j,l share a softmax block.
    smask: (1, F_PAD) f32 mask, 1.0 on softmax lanes."""
    segmat = np.zeros((F_PAD, F_PAD), np.float32)
    smask = np.zeros((1, F_PAD), np.float32)
    idx = 0
    for act, length in ACT_LAYOUT:
        if act == "softmax":
            segmat[idx:idx + length, idx:idx + length] = 1.0
            smask[0, idx:idx + length] = 1.0
        idx += length
    return jnp.asarray(segmat), jnp.asarray(smask)


def generator_kernel(x_ref, w1_ref, b1_ref, w2_ref, b2_ref, w3_ref, b3_ref,
                     segmat_ref, smask_ref, out_ref):
    """Fused residual-MLP generator + MultiActivationHead for one (TM, 128) batch tile.

    Lane layout of the packed activation register h:
        lanes [0:D0)  = x (noise ++ cond),  [D0:D1) = a1,  [D1:D2) = a2,  rest = 0
    Packed weights have exactly-zero pad rows/cols, and LeakyReLU(0)=0, so pad lanes
    stay 0 through every residual add.
    """
    h0 = x_ref[...]                                               # (TM, 128)

    # Residual layer 1: a1 = LeakyReLU(x W1 + b1) lands in lanes [D0:D1)
    z1 = jnp.dot(h0.astype(w1_ref.dtype), w1_ref[...],
                 preferred_element_type=jnp.float32) + b1_ref[...]
    h1 = h0 + jnp.maximum(z1, NEG_SLOPE * z1)                     # concat == one VPU add

    # Residual layer 2: a2 = LeakyReLU([a1|x] W2 + b2) lands in lanes [D1:D2)
    z2 = jnp.dot(h1.astype(w2_ref.dtype), w2_ref[...],
                 preferred_element_type=jnp.float32) + b2_ref[...]
    h2 = h1 + jnp.maximum(z2, NEG_SLOPE * z2)

    # Final Linear (columns padded to F_PAD with exact zeros)
    logits = jnp.dot(h2.astype(w3_ref.dtype), w3_ref[...],
                     preferred_element_type=jnp.float32) + b3_ref[...]   # (TM, F_PAD)

    if HAS_SOFTMAX:
        # ---- MultiActivationHead: in registers, one full-width store ----
        is_sm = smask_ref[...] > 0.5                              # (1, F_PAD) bool
        # single masked global row-max over all softmax lanes (shift-invariant)
        row_max = jnp.max(jnp.where(is_sm, logits, -jnp.inf), axis=-1, keepdims=True)
        e = jnp.where(is_sm, jnp.exp(logits - row_max), 0.0)
        # per-lane denominator = sum of exp over its own softmax segment (one matmul)
        denom = jnp.dot(e, segmat_ref[...], preferred_element_type=jnp.float32)
        inv = pl.reciprocal(jnp.where(is_sm, denom, 1.0), approx=True)   # EUP slot
        out_ref[...] = jnp.where(is_sm, e * inv, logits)
    else:
        out_ref[...] = logits


def prepare_params(params, dtype=jnp.float32):
    """Host-side: pack/permute weights into the lane layout (x,a1,a2 -> 128 lanes),
    pad the final layer to F_PAD lane-dense columns with exact zeros, cast weights,
    and build the softmax segment-matrix / lane-mask constants."""
    w1, b1, w2, b2, w3, b3 = (np.asarray(a, np.float32) for a in params)

    # Layer 1: x(rows 0:D0) -> a1 lanes [D0:D1)
    w1p = np.zeros((K_PAD, K_PAD), np.float32)
    w1p[0:D0, D0:D1] = w1
    b1p = np.zeros((1, K_PAD), np.float32)
    b1p[0, D0:D1] = b1.reshape(-1)

    # Layer 2: torch concat order is [a1 | x]; permute rows to the lane layout.
    w2p = np.zeros((K_PAD, K_PAD), np.float32)
    w2p[D0:D1, D1:D2] = w2[0:HIDDEN, :]          # a1 rows
    w2p[0:D0,  D1:D2] = w2[HIDDEN:D1, :]         # x rows
    b2p = np.zeros((1, K_PAD), np.float32)
    b2p[0, D1:D2] = b2.reshape(-1)

    # Final Linear: torch concat order is [a2 | a1 | x]; permute + pad cols to F_PAD.
    w3p = np.zeros((K_PAD, F_PAD), np.float32)
    w3p[D1:D2, 0:N_FEATURES] = w3[0:D1, :]               # a2 rows
    w3p[D0:D1, 0:N_FEATURES] = w3[D1:D1 + HIDDEN, :]     # a1 rows
    w3p[0:D0,  0:N_FEATURES] = w3[D1 + HIDDEN:D2, :]     # x rows
    b3p = np.zeros((1, F_PAD), np.float32)
    b3p[0, 0:N_FEATURES] = b3.reshape(-1)

    segmat, smask = _build_head_constants()
    cast = lambda a: jnp.asarray(a, dtype)
    return (cast(w1p), jnp.asarray(b1p), cast(w2p), jnp.asarray(b2p),
            cast(w3p), jnp.asarray(b3p), segmat, smask)


def generator_forward(x, prepared, *, tm=512):
    """Gridded over the batch; weights/constants stay VMEM-resident across grid steps."""
    batch = x.shape[0]
    wdtype = prepared[0].dtype

    # Big tiles amortize the ~0.35us/step overhead (512-1024 rows is the plateau), but
    # cap so the grid has >=2 steps: v7x megacore shards the "parallel" axis over 2 TCs.
    tm = min(tm, _round_up(batch, 8))
    if batch > 8:
        tm = min(tm, _round_up((batch + 1) // 2, 8))
    tm = max(tm, 8)
    padded = _round_up(batch, tm)

    # Lane-dense packed input: x placed in lanes [0:D0), exact zeros elsewhere
    # (pad lanes must be zero for the residual lane-packing to be exact).
    xp = jnp.zeros((padded, K_PAD), wdtype).at[:batch, :D0].set(x.astype(wdtype))

    def const_spec(a):
        return pl.BlockSpec(a.shape, lambda i: (0, 0))

    in_specs = ([pl.BlockSpec((tm, K_PAD), lambda i: (i, 0))]
                + [const_spec(a) for a in prepared])
    out_specs = pl.BlockSpec((tm, F_PAD), lambda i: (i, 0))

    weight_bytes = sum(int(np.prod(a.shape)) * a.dtype.itemsize for a in prepared)
    cost = pl.CostEstimate(
        flops=2 * padded * (3 * K_PAD * K_PAD + F_PAD * F_PAD),
        transcendentals=padded * F_PAD,
        bytes_accessed=4 * padded * (K_PAD + F_PAD) + weight_bytes,
    )

    out = pl.pallas_call(
        generator_kernel,
        out_shape=jax.ShapeDtypeStruct((padded, F_PAD), jnp.float32),
        grid=(padded // tm,),
        in_specs=in_specs,
        out_specs=out_specs,
        compiler_params=pltpu.CompilerParams(
            dimension_semantics=("parallel",)),
        cost_estimate=cost,
    )(xp, *prepared)
    return out[:batch, :N_FEATURES]


def init_linear(key, fan_in, fan_out):
    """Deterministic PyTorch-default-style Linear init (uniform +-1/sqrt(fan_in))."""
    kw, kb = jax.random.split(key)
    bound = 1.0 / np.sqrt(fan_in)
    w = jax.random.uniform(kw, (fan_in, fan_out), jnp.float32, -bound, bound)
    b = jax.random.uniform(kb, (1, fan_out), jnp.float32, -bound, bound)
    return w, b


def reference_forward(x, params):
    """Plain-JAX mirror of the PyTorch generator forward (uses the UNpacked weights)."""
    w1, b1, w2, b2, w3, b3 = params
    z1 = x @ w1 + b1
    a1 = jnp.where(z1 >= 0, z1, NEG_SLOPE * z1)
    h1 = jnp.concatenate([a1, x], axis=-1)
    z2 = h1 @ w2 + b2
    a2 = jnp.where(z2 >= 0, z2, NEG_SLOPE * z2)
    h2 = jnp.concatenate([a2, h1], axis=-1)
    o = h2 @ w3 + b3
    segs, idx = [], 0
    for act, length in ACT_LAYOUT:
        s = o[:, idx:idx + length]
        if act == "softmax":
            s = jax.nn.softmax(s, axis=-1)
        segs.append(s)
        idx += length
    return jnp.concatenate(segs, axis=-1)


if __name__ == "__main__":
    key = jax.random.PRNGKey(0)
    k_noise, k_cond, k1, k2, k3 = jax.random.split(key, 5)

    count = 20  # TabularGAN.forward(count, ...)

    # fixed_noise = torch.randn(count, n_units_latent)
    # TODO(synk): production path could generate the noise in-kernel
    # (pltpu.prng_seed + pltpu.prng_random_bits + Box-Muller) to skip its HBM round
    # trip; kept host-side here for exact parity with the pure-JAX reference.
    noise = jax.random.normal(k_noise, (count, N_UNITS_LATENT), jnp.float32)

    # TODO(synk): ConditionalDatasetSampler.sample_conditional / TabularEncoder fitting
    # are data-dependent pandas/sklearn logic with no Pallas equivalent; emulate the
    # sampled conditional with a deterministic one-hot matrix.
    cond_ids = jax.random.randint(k_cond, (count,), 0, N_UNITS_COND)
    cond = jax.nn.one_hot(cond_ids, N_UNITS_COND, dtype=jnp.float32)

    # _append_optional_cond: concat noise and conditional
    x = jnp.concatenate([noise, cond], axis=-1)          # (count, D0)

    w1, b1 = init_linear(k1, D0, HIDDEN)                  # ResidualLayer 1
    w2, b2 = init_linear(k2, D1, D1)                      # ResidualLayer 2
    w3, b3 = init_linear(k3, D2, N_FEATURES)              # final Linear
    raw_params = (w1, b1, w2, b2, w3, b3)

    # f32 weights for the reference check; pass dtype=jnp.bfloat16 for v6e/v7x MXU
    # (relax the tolerance below if you do).
    prepared = prepare_params(raw_params, dtype=jnp.float32)

    out = generator_forward(x, prepared)                  # tm auto-capped -> 2 grid steps
    out = jax.block_until_ready(out)
    assert out.shape == (count, N_FEATURES)

    ref = jax.block_until_ready(reference_forward(x, raw_params))
    # Tolerance relaxed vs. exact f32: pl.reciprocal(approx=True) adds ~2^-12 relative
    # error to the softmax probabilities (acceptable for GAN sampling).
    np.testing.assert_allclose(np.asarray(out), np.asarray(ref), rtol=2e-3, atol=2e-3)

    print("KERNEL_OK")
</pallas_src>

<mosaic_0001>
module attributes {stable_mosaic.version = 11 : i64} {
  func.func @generator_kernel(%arg0: i32, %arg1: memref<16x128xf32, #tpu.memory_space<vmem>>, %arg2: memref<128x128xf32, #tpu.memory_space<vmem>>, %arg3: memref<1x128xf32, #tpu.memory_space<vmem>>, %arg4: memref<128x128xf32, #tpu.memory_space<vmem>>, %arg5: memref<1x128xf32, #tpu.memory_space<vmem>>, %arg6: memref<128x128xf32, #tpu.memory_space<vmem>>, %arg7: memref<1x128xf32, #tpu.memory_space<vmem>>, %arg8: memref<128x128xf32, #tpu.memory_space<vmem>>, %arg9: memref<1x128xf32, #tpu.memory_space<vmem>>, %arg10: memref<16x128xf32, #tpu.memory_space<vmem>>) attributes {dimension_semantics = [#tpu.dimension_semantics<parallel>], iteration_bounds = array<i64: 2>, scalar_prefetch = 0 : i64, scratch_operands = 0 : i64, tpu.core_type = #tpu.core_type<tc>, window_params = [{transform_indices = @transform_0, window_bounds = array<i64: 16, 128>}, {pipeline_mode = #tpu.pipeline_mode<synchronous>, transform_indices = @transform_1, window_bounds = array<i64: 128, 128>}, {pipeline_mode = #tpu.pipeline_mode<synchronous>, transform_indices = @transform_2, window_bounds = array<i64: 1, 128>}, {pipeline_mode = #tpu.pipeline_mode<synchronous>, transform_indices = @transform_3, window_bounds = array<i64: 128, 128>}, {pipeline_mode = #tpu.pipeline_mode<synchronous>, transform_indices = @transform_4, window_bounds = array<i64: 1, 128>}, {pipeline_mode = #tpu.pipeline_mode<synchronous>, transform_indices = @transform_5, window_bounds = array<i64: 128, 128>}, {pipeline_mode = #tpu.pipeline_mode<synchronous>, transform_indices = @transform_6, window_bounds = array<i64: 1, 128>}, {pipeline_mode = #tpu.pipeline_mode<synchronous>, transform_indices = @transform_7, window_bounds = array<i64: 128, 128>}, {pipeline_mode = #tpu.pipeline_mode<synchronous>, transform_indices = @transform_8, window_bounds = array<i64: 1, 128>}, {transform_indices = @transform_9, window_bounds = array<i64: 16, 128>}]} {
    %c0 = arith.constant 0 : index
    %c0_0 = arith.constant 0 : index
    %0 = vector.load %arg1[%c0, %c0_0] : memref<16x128xf32, #tpu.memory_space<vmem>>, vector<16x128xf32>
    %c0_1 = arith.constant 0 : index
    %c0_2 = arith.constant 0 : index
    %1 = vector.load %arg2[%c0_1, %c0_2] : memref<128x128xf32, #tpu.memory_space<vmem>>, vector<128x128xf32>
    %cst = arith.constant dense<0.000000e+00> : vector<16x128xf32>
    %2 = tpu.matmul %0, %1, %cst {dimension_numbers = #tpu.dot_dimension_numbers<[1], [0], [0], [1], [0, 0, 1, 1], [], []>} : vector<16x128xf32>, vector<128x128xf32>, vector<16x128xf32> -> vector<16x128xf32>
    %c0_3 = arith.constant 0 : index
    %c0_4 = arith.constant 0 : index
    %3 = vector.load %arg3[%c0_3, %c0_4] : memref<1x128xf32, #tpu.memory_space<vmem>>, vector<1x128xf32>
    %4 = vector.broadcast %3 : vector<1x128xf32> to vector<16x128xf32>
    %5 = arith.addf %2, %4 : vector<16x128xf32>
    %cst_5 = arith.constant 0.00999999977 : f32
    %6 = vector.broadcast %cst_5 : f32 to vector<16x128xf32>
    %7 = arith.mulf %6, %5 : vector<16x128xf32>
    %8 = arith.maximumf %5, %7 : vector<16x128xf32>
    %9 = arith.addf %0, %8 : vector<16x128xf32>
    %c0_6 = arith.constant 0 : index
    %c0_7 = arith.constant 0 : index
    %10 = vector.load %arg4[%c0_6, %c0_7] : memref<128x128xf32, #tpu.memory_space<vmem>>, vector<128x128xf32>
    %cst_8 = arith.constant dense<0.000000e+00> : vector<16x128xf32>
    %11 = tpu.matmul %9, %10, %cst_8 {dimension_numbers = #tpu.dot_dimension_numbers<[1], [0], [0], [1], [0, 0, 1, 1], [], []>} : vector<16x128xf32>, vector<128x128xf32>, vector<16x128xf32> -> vector<16x128xf32>
    %c0_9 = arith.constant 0 : index
    %c0_10 = arith.constant 0 : index
    %12 = vector.load %arg5[%c0_9, %c0_10] : memref<1x128xf32, #tpu.memory_space<vmem>>, vector<1x128xf32>
    %13 = vector.broadcast %12 : vector<1x128xf32> to vector<16x128xf32>
    %14 = arith.addf %11, %13 : vector<16x128xf32>
    %cst_11 = arith.constant 0.00999999977 : f32
    %15 = vector.broadcast %cst_11 : f32 to vector<16x128xf32>
    %16 = arith.mulf %15, %14 : vector<16x128xf32>
    %17 = arith.maximumf %14, %16 : vector<16x128xf32>
    %18 = arith.addf %9, %17 : vector<16x128xf32>
    %c0_12 = arith.constant 0 : index
    %c0_13 = arith.constant 0 : index
    %19 = vector.load %arg6[%c0_12, %c0_13] : memref<128x128xf32, #tpu.memory_space<vmem>>, vector<128x128xf32>
    %cst_14 = arith.constant dense<0.000000e+00> : vector<16x128xf32>
    %20 = tpu.matmul %18, %19, %cst_14 {dimension_numbers = #tpu.dot_dimension_numbers<[1], [0], [0], [1], [0, 0, 1, 1], [], []>} : vector<16x128xf32>, vector<128x128xf32>, vector<16x128xf32> -> vector<16x128xf32>
    %c0_15 = arith.constant 0 : index
    %c0_16 = arith.constant 0 : index
    %21 = vector.load %arg7[%c0_15, %c0_16] : memref<1x128xf32, #tpu.memory_space<vmem>>, vector<1x128xf32>
    %22 = vector.broadcast %21 : vector<1x128xf32> to vector<16x128xf32>
    %23 = arith.addf %20, %22 : vector<16x128xf32>
    %c0_17 = arith.constant 0 : index
    %c0_18 = arith.constant 0 : index
    %24 = vector.load %arg9[%c0_17, %c0_18] : memref<1x128xf32, #tpu.memory_space<vmem>>, vector<1x128xf32>
    %cst_19 = arith.constant 5.000000e-01 : f32
    %25 = vector.broadcast %cst_19 : f32 to vector<1x128xf32>
    %26 = arith.cmpf ogt, %24, %25 : vector<1x128xf32>
    %cst_20 = arith.constant 0xFF800000 : f32
    %27 = vector.shape_cast %26 : vector<1x128xi1> to vector<1x128xi1>
    %28 = vector.broadcast %27 : vector<1x128xi1> to vector<16x128xi1>
    %29 = vector.broadcast %cst_20 : f32 to vector<16x128xf32>
    %30 = arith.select %28, %23, %29 : vector<16x128xi1>, vector<16x128xf32>
    %cst_21 = arith.constant dense<0xFF800000> : vector<16xf32>
    %31 = vector.multi_reduction <maximumf>, %30, %cst_21 [1] : vector<16x128xf32> to vector<16xf32>
    %32 = vector.shape_cast %31 : vector<16xf32> to vector<16x1xf32>
    %33 = vector.broadcast %32 : vector<16x1xf32> to vector<16x128xf32>
    %34 = arith.subf %23, %33 : vector<16x128xf32>
    %35 = math.exp %34 : vector<16x128xf32>
    %cst_22 = arith.constant 0.000000e+00 : f32
    %36 = vector.shape_cast %26 : vector<1x128xi1> to vector<1x128xi1>
    %37 = vector.broadcast %36 : vector<1x128xi1> to vector<16x128xi1>
    %38 = vector.broadcast %cst_22 : f32 to vector<16x128xf32>
    %39 = arith.select %37, %35, %38 : vector<16x128xi1>, vector<16x128xf32>
    %c0_23 = arith.constant 0 : index
    %c0_24 = arith.constant 0 : index
    %40 = vector.load %arg8[%c0_23, %c0_24] : memref<128x128xf32, #tpu.memory_space<vmem>>, vector<128x128xf32>
    %cst_25 = arith.constant dense<0.000000e+00> : vector<16x128xf32>
    %41 = tpu.matmul %39, %40, %cst_25 {dimension_numbers = #tpu.dot_dimension_numbers<[1], [0], [0], [1], [0, 0, 1, 1], [], []>} : vector<16x128xf32>, vector<128x128xf32>, vector<16x128xf32> -> vector<16x128xf32>
    %cst_26 = arith.constant 1.000000e+00 : f32
    %42 = vector.shape_cast %26 : vector<1x128xi1> to vector<1x128xi1>
    %43 = vector.broadcast %42 : vector<1x128xi1> to vector<16x128xi1>
    %44 = vector.broadcast %cst_26 : f32 to vector<16x128xf32>
    %45 = arith.select %43, %41, %44 : vector<16x128xi1>, vector<16x128xf32>
    %46 = tpu.reciprocal %45 {approx = true} : vector<16x128xf32> -> vector<16x128xf32>
    %47 = arith.mulf %39, %46 : vector<16x128xf32>
    %48 = vector.shape_cast %26 : vector<1x128xi1> to vector<1x128xi1>
    %49 = vector.broadcast %48 : vector<1x128xi1> to vector<16x128xi1>
    %50 = arith.select %49, %47, %23 : vector<16x128xi1>, vector<16x128xf32>
    %c0_27 = arith.constant 0 : index
    %c0_28 = arith.constant 0 : index
    %51 = vector.load %arg10[%c0_27, %c0_28] : memref<16x128xf32, #tpu.memory_space<vmem>>, vector<16x128xf32>
    tpu.vector_store %arg10[%c0_27, %c0_28], %50 {strides = array<i32>} : memref<16x128xf32, #tpu.memory_space<vmem>>, vector<16x128xf32>,
    return
  }
  func.func @transform_0(%arg0: i32) -> (i32, i32) {
    %c0_i32 = arith.constant 0 : i32
    %c0_i32_0 = arith.constant 0 : i32
    return %arg0, %c0_i32 : i32, i32
  }
  func.func @transform_1(%arg0: i32) -> (i32, i32) {
    %c0_i32 = arith.constant 0 : i32
    %c0_i32_0 = arith.constant 0 : i32
    %c0_i32_1 = arith.constant 0 : i32
    return %c0_i32, %c0_i32_0 : i32, i32
  }
  func.func @transform_2(%arg0: i32) -> (i32, i32) {
    %c0_i32 = arith.constant 0 : i32
    %c0_i32_0 = arith.constant 0 : i32
    %c0_i32_1 = arith.constant 0 : i32
    return %c0_i32, %c0_i32_0 : i32, i32
  }
  func.func @transform_3(%arg0: i32) -> (i32, i32) {
    %c0_i32 = arith.constant 0 : i32
    %c0_i32_0 = arith.constant 0 : i32
    %c0_i32_1 = arith.constant 0 : i32
    return %c0_i32, %c0_i32_0 : i32, i32
  }
  func.func @transform_4(%arg0: i32) -> (i32, i32) {
    %c0_i32 = arith.constant 0 : i32
    %c0_i32_0 = arith.constant 0 : i32
    %c0_i32_1 = arith.constant 0 : i32
    return %c0_i32, %c0_i32_0 : i32, i32
  }
  func.func @transform_5(%arg0: i32) -> (i32, i32) {
    %c0_i32 = arith.constant 0 : i32
    %c0_i32_0 = arith.constant 0 : i32
    %c0_i32_1 = arith.constant 0 : i32
    return %c0_i32, %c0_i32_0 : i32, i32
  }
  func.func @transform_6(%arg0: i32) -> (i32, i32) {
    %c0_i32 = arith.constant 0 : i32
    %c0_i32_0 = arith.constant 0 : i32
    %c0_i32_1 = arith.constant 0 : i32
    return %c0_i32, %c0_i32_0 : i32, i32
  }
  func.func @transform_7(%arg0: i32) -> (i32, i32) {
    %c0_i32 = arith.constant 0 : i32
    %c0_i32_0 = arith.constant 0 : i32
    %c0_i32_1 = arith.constant 0 : i32
    return %c0_i32, %c0_i32_0 : i32, i32
  }
  func.func @transform_8(%arg0: i32) -> (i32, i32) {
    %c0_i32 = arith.constant 0 : i32
    %c0_i32_0 = arith.constant 0 : i32
    %c0_i32_1 = arith.constant 0 : i32
    return %c0_i32, %c0_i32_0 : i32, i32
  }
  func.func @transform_9(%arg0: i32) -> (i32, i32) {
    %c0_i32 = arith.constant 0 : i32
    %c0_i32_0 = arith.constant 0 : i32
    return %arg0, %c0_i32 : i32, i32
  }
}

</mosaic_0001>

<bundles_post_ra>
// kernel: tpu_custom_call.1
= control target key start
LH: loop header
LB: loop body
LE: loop exit
PB: predicated region body
PF: predicated region fallthrough
CT: control target
= control target key end

     0   :  { %s2054_s0 = inlined_call_operand.hbm [shape: f32[32,128], index: 0, kind: input, shape index: {}]   ;;  %s2055_s1 = inlined_call_operand.hbm [shape: f32[128,128], index: 1, kind: input, shape index: {}]   ;;  %s2056_s2 = inlined_call_operand.vmem [shape: f32[1,128], index: 2, kind: input, shape index: {}]   ;;  %s2057_s3 = inlined_call_operand.hbm [shape: f32[128,128], index: 3, kind: input, shape index: {}]   ;;  %s2058_s4 = inlined_call_operand.vmem [shape: f32[1,128], index: 4, kind: input, shape index: {}]   ;;  %s2059_s5 = inlined_call_operand.hbm [shape: f32[128,128], index: 5, kind: input, shape index: {}]   ;;  %s2060_s6 = inlined_call_operand.vmem [shape: f32[1,128], index: 6, kind: input, shape index: {}]   ;;  %s2061_s7 = inlined_call_operand.hbm [shape: f32[128,128], index: 7, kind: input, shape index: {}]   ;;  %s2062_s8 = inlined_call_operand.vmem [shape: f32[1,128], index: 8, kind: input, shape index: {}]   ;;  %s2063_s9 = inlined_call_operand.hbm [shape: f32[32,128], index: 9, kind: output, shape index: {}]  }
   0x1   :  { %2070 = sst [smem:[#allocation18_spill]] %s2063_s9 }
   0x2   :  { %14 = vsyncpa [#allocation3], 0 }
   0x3   :  { %16 = vsyncpa [#allocation3 + $0x1], 0 }
   0x4   :  { %17 = vsyncpa [#allocation6], 0 }
   0x5   :  { %18 = vsyncpa [#allocation9], 0 }
   0x6   :  { %19 = vsyncpa [#allocation4], 0 }
   0x7   :  { %21 = vsyncpa [#allocation4 + $0x1], 0  ;;  %s1715_s30 = smov 0   ;;  %s1717_s10 = smov 0  }
   0x8   :  { %s1719_s11 = smov 0   ;;  %s1721_s12 = smov 0  }
   0x9 LB: > { %2071 = sst [smem:[#allocation16_spill]] %s1640_s30  ;;  %s1736_s13 = sadd.s32 4294967295, %s1652_s12   ;;  %s1652_s12 = sphi %s1721_s12, %s2095_s12   ;;  %s1648_s11 = sphi %s1719_s11, %s2094_s11   ;;  %s1644_s10 = sphi %s1717_s10, %s2093_s10   ;;  %s1640_s30 = sphi %s1715_s30, %s2092_s30  }
   0xa   : > { %s967_s14 = sadd.s32 4294967294, %s1652_s12   ;;  %p47_p0 = scmp.ne.s32.totalorder %s1644_s10, %s1640_s30 }
   0xb   : > { %p2064_p1 = scmp.eq.s32.totalorder %s1736_s13, 0  ;;  %p245_p3 = scmp.eq.s32.totalorder %s967_s14, 1 }
   0xc   : > { %p968_p5 = scmp.ge.s32.totalorder %s1652_s12, 1  ;;  %p252_p7 = scmp.lt.s32.totalorder %s1652_s12, 3 }
   0xd   : > { %p1745_p4 = por %p2064_p1, %p47_p0  ;;  %p1750_p6 = por %p245_p3, %p47_p0 }
   0xe   : > { %p1755_p8 = pnand %p968_p5, %p252_p7  ;;  %s1654_s18 = smov [#allocation5]  }
   0xf   : > { %s2072_s15 = scalar_select %p1745_p4, 1, 0 }
  0x10   : > { %s2073_s16 = scalar_select %p1750_p6, 1, 0 }
  0x11   : > { %s2075_s17 = scalar_select %p1755_p8, 1, 0 }
  0x12   : > { %2074 = sst [smem:[#allocation17_spill]] %s2073_s16  ;;  %s264_s19 = sshll.u32 %s1654_s18, 4  ;;  %s1759_s19 = int_to_ptr.vmem [resolvable:$true] %s264_s19 }
  0x13   : > { %p1356_p9 = pneg %p1755_p8  ;;  %s1655_s21 = smov [#allocation8]  }
  0x14   : > { %s296_s22 = sshll.u32 %s1655_s21, 4  ;;  %s1656_s23 = smov [#allocation7]   ;;  %s1770_s22 = int_to_ptr.vmem [resolvable:$true] %s296_s22 }
  0x15   : > { %p1766_p11 = pnand %p1356_p9, %p2064_p1  ;;  %s1772_s24 = sshll.u32 %s1656_s23, 4  ;;  %s281_s24 = int_to_ptr.vmem [resolvable:$true] %s1772_s24 }
  0x16   : > { %s1436_s27 = scalar_lea.hbm %s2055_s1, 2048 }
  0x17   : > { %p1437_p12 = scmp.ne.s32.totalorder %s2055_s1, %s1436_s27  ;;  %p1782_p13 = pneg %p1766_p11 }
  0x18   : > { %p1443_p5 = scmp.lt.u32.totalorder %s1436_s27, %s2055_s1 }
  0x19   : > { %p1439_p0 = pnand %p1782_p13, %p1437_p12 }
  0x1b   : > { %p1440_p3 = pneg %p1439_p0 }
  0x1d   : > { %p1445_p7 = pnand %p1443_p5, %p1440_p3 }
  0x1f   : > { %1448 = shalt.err (!%p1445_p7)
}
  0x20   : > { %s1449_s23 = scalar_lea.vmem %s1759_s19, 2048  ;;  %p1457_p2 = scmp.lt.s32.totalorder %s1759_s19, %s1759_s19 }
  0x21   : > { %p1450_p9 = scmp.ne.s32.totalorder %s1759_s19, %s1449_s23  ;;  %p1458_p6 = scmp.lt.s32.totalorder %s1449_s23, %s1449_s23 }
  0x23   : > { %p1452_p10 = pnand %p1450_p9, %p1782_p13  ;;  %p1459_p12 = por %p1458_p6, %p1457_p2 }
  0x25   : > { %p1453_p1 = pneg %p1452_p10 }
  0x27   : > { %p1460_p0 = pnand %p1459_p12, %p1453_p1 }
  0x29   : > { %1463 = shalt.err (!%p1460_p0)
}
  0x2a   : > { %s1657_s25 = smov 128   ;;  %s1658_s26 = smov 8  }
  0x2b   : > { %1359 = dma.hbm_to_vmem [thread:$0]  (!%p1766_p11), %s2055_s1, 2048, %s1759_s19, [#allocation6], %s1657_s25, %s1657_s25, %s1658_s26  }
  0x2c   : > { %s1464_s21 = scalar_lea.hbm %s2059_s5, 2048 }
  0x2d   : > { %p1465_p1 = scmp.ne.s32.totalorder %s2059_s5, %s1464_s21  ;;  %p1471_p10 = scmp.lt.u32.totalorder %s1464_s21, %s2059_s5 }
  0x2f   : > { %p1467_p2 = pnand %p1465_p1, %p1782_p13 }
  0x31   : > { %p1468_p6 = pneg %p1467_p2 }
  0x33   : > { %p1473_p3 = pnand %p1471_p10, %p1468_p6 }
  0x35   : > { %1476 = shalt.err (!%p1473_p3)
}
  0x36   : > { %s1477_s19 = scalar_lea.vmem %s1770_s22, 2048  ;;  %p1485_p12 = scmp.lt.s32.totalorder %s1770_s22, %s1770_s22 }
  0x37   : > { %p1478_p5 = scmp.ne.s32.totalorder %s1770_s22, %s1477_s19  ;;  %p1486_p0 = scmp.lt.s32.totalorder %s1477_s19, %s1477_s19 }
  0x39   : > { %p1480_p7 = pnand %p1478_p5, %p1782_p13  ;;  %p1487_p1 = por %p1486_p0, %p1485_p12 }
  0x3b   : > { %p1481_p9 = pneg %p1480_p7 }
  0x3d   : > { %p1488_p2 = pnand %p1487_p1, %p1481_p9 }
  0x3f   : > { %1491 = shalt.err (!%p1488_p2)
}
  0x40   : > { %1365 = dma.hbm_to_vmem [thread:$0]  (!%p1766_p11), %s2059_s5, 2048, %s1770_s22, [#allocation9], %s1657_s25, %s1657_s25, %s1658_s26  }
  0x41   : > { %s1492_s28 = scalar_lea.hbm %s2057_s3, 2048 }
  0x42   : > { %p1493_p6 = scmp.ne.s32.totalorder %s2057_s3, %s1492_s28  ;;  %p1499_p5 = scmp.lt.u32.totalorder %s1492_s28, %s2057_s3 }
  0x44   : > { %p1495_p10 = pnand %p1493_p6, %p1782_p13 }
  0x46   : > { %p1496_p3 = pneg %p1495_p10 }
  0x48   : > { %p1501_p7 = pnand %p1499_p5, %p1496_p3 }
  0x4a   : > { %1504 = shalt.err (!%p1501_p7)
}
  0x4b   : > { %s1505_s19 = scalar_lea.vmem %s281_s24, 2048  ;;  %p1513_p1 = scmp.lt.s32.totalorder %s281_s24, %s281_s24 }
  0x4c   : > { %p1506_p9 = scmp.ne.s32.totalorder %s281_s24, %s1505_s19  ;;  %p1514_p2 = scmp.lt.s32.totalorder %s1505_s19, %s1505_s19 }
  0x4e   : > { %p1508_p12 = pnand %p1506_p9, %p1782_p13  ;;  %p1515_p4 = por %p1514_p2, %p1513_p1 }
  0x50   : > { %p1509_p0 = pneg %p1508_p12 }
  0x52   : > { %p1516_p8 = pnand %p1515_p4, %p1509_p0 }
  0x54   : > { %1519 = shalt.err (!%p1516_p8)
}
  0x55   : > { %1362 = dma.hbm_to_vmem [thread:$0]  (!%p1766_p11), %s2057_s3, 2048, %s281_s24, [#allocation6], %s1657_s25, %s1657_s25, %s1658_s26  }
  0x56   : > { %s1659_s30 = smov [#allocation10]   ;;  %s1520_s29 = scalar_lea.hbm %s2061_s7, 2048 }
  0x57   : > { %s312_s16 = sshll.u32 %s1659_s30, 4  ;;  %p1521_p4 = scmp.ne.s32.totalorder %s2061_s7, %s1520_s29  ;;  %s313_s16 = int_to_ptr.vmem [resolvable:$true] %s312_s16 }
  0x58   : > { %p1527_p10 = scmp.lt.u32.totalorder %s1520_s29, %s2061_s7 }
  0x59   : > { %p1523_p8 = pnand %p1521_p4, %p1782_p13 }
  0x5b   : > { %p1524_p6 = pneg %p1523_p8 }
  0x5d   : > { %p1529_p3 = pnand %p1527_p10, %p1524_p6 }
  0x5f   : > { %1532 = shalt.err (!%p1529_p3)
}
  0x60   : > { %s1533_s24 = scalar_lea.vmem %s313_s16, 2048  ;;  %p1541_p12 = scmp.lt.s32.totalorder %s313_s16, %s313_s16 }
  0x61   : > { %p1534_p5 = scmp.ne.s32.totalorder %s313_s16, %s1533_s24  ;;  %p1542_p0 = scmp.lt.s32.totalorder %s1533_s24, %s1533_s24 }
  0x63   : > { %p1536_p7 = pnand %p1534_p5, %p1782_p13  ;;  %p1543_p1 = por %p1542_p0, %p1541_p12 }
  0x65   : > { %p1537_p9 = pneg %p1536_p7 }
  0x67   : > { %p1544_p2 = pnand %p1543_p1, %p1537_p9 }
  0x69   : > { %1547 = shalt.err (!%p1544_p2)
}
  0x6a   : > { %1368 = dma.hbm_to_vmem [thread:$0]  (!%p1766_p11), %s2061_s7, 2048, %s313_s16, [#allocation9], %s1657_s25, %s1657_s25, %s1658_s26  }
  0x6b   : > { %s1876_s14 = sadd.s32 1, %s1652_s12   ;;  %s34_s20 = sadd.s32 1, %s1648_s11 }
  0x6c   : > { %s31_s30 = ssub.s32 %s1652_s12, %s1876_s14  ;;  %p41_p13 = scmp.ne.s32.totalorder %s1648_s11, %s1644_s10 }
  0x6d   : > { %p32_p4 = scmp.eq.s32.totalorder %s31_s30, 0  ;;  %p42_p8 = scmp.eq.s32.totalorder %s1652_s12, 0 }
  0x6e   : > { %p2078_p6 = scmp.eq.s32.totalorder %s1736_s13, 1  ;;  %p1381_p3 = scmp.lt.s32.totalorder %s1652_s12, 2 }
  0x6f   : > { %s1892_s28 = scalar_select %p32_p4, %s1648_s11, %s34_s20  }
  0x70   : > { %p1886_p10 = por %p2078_p6, %p41_p13  ;;  %p43_p5 = por %p42_p8, %p41_p13 }
  0x71   : > { %s329_s29 = sand.u32 1, %s1648_s11   ;;  %s994_s16 = sshll.u32 %s1652_s12, 8 }
  0x72   : > { %s974_s18 = sshll.u32 %s329_s29, 4  ;;  %s1899_s19 = scalar_lea.hbm %s2054_s0, %s994_s16 }
  0x73   : > { %s333_s24 = scalar_lea.vmem [#allocation2], %s974_s18  ;;  %p1903_p11 = pnand %p1381_p3, %p43_p5 }
  0x74   : > { %s340_s22 = sshll.u32 %s333_s24, 4  ;;  %s1907_s20 = scalar_lea.sflag [#allocation3], %s329_s29  ;;  %s1901_s22 = int_to_ptr.vmem [resolvable:$true] %s340_s22 }
  0x75   : > { %s1548_s30 = scalar_lea.hbm %s1899_s19, 256  ;;  %p1550_p9 = pneg %p1903_p11 }
  0x76   : > { %p1549_p7 = scmp.ne.s32.totalorder %s1899_s19, %s1548_s30  ;;  %s1553_s21 = scalar_lea.hbm %s2054_s0, 512 }
  0x77   : > { %p1554_p1 = scmp.lt.u32.totalorder %s1899_s19, %s2054_s0  ;;  %p1555_p2 = scmp.lt.u32.totalorder %s1553_s21, %s1548_s30 }
  0x78   : > { %p1551_p12 = pnand %p1550_p9, %p1549_p7  ;;  %p1557_p4 = scmp.lt.u32.totalorder %s1548_s30, %s1899_s19 }
  0x79   : > { %p1556_p13 = por %p1555_p2, %p1554_p1 }
  0x7a   : > { %p1552_p0 = pneg %p1551_p12 }
  0x7b   : > { %p1558_p8 = por %p1557_p4, %p1556_p13 }
  0x7d   : > { %p1559_p6 = pnand %p1558_p8, %p1552_p0 }
  0x7f   : > { %1562 = shalt.err (!%p1559_p6)
}
  0x80   : > { %s1563_s29 = scalar_lea.vmem %s1901_s22, 256  ;;  %s1660_s18 = smov [#allocation2]  }
  0x81   : > { %p1564_p3 = scmp.ne.s32.totalorder %s1901_s22, %s1563_s29  ;;  %s1568_s16 = sshll.u32 %s1660_s18, 4  ;;  %s1569_s16 = int_to_ptr.vmem [resolvable:$false] %s1568_s16 }
  0x82   : > { %s1570_s23 = scalar_lea.vmem %s1569_s16, 512  ;;  %p1571_p12 = scmp.lt.s32.totalorder %s1901_s22, %s1569_s16 }
  0x83   : > { %p1566_p5 = pnand %p1564_p3, %p1550_p9  ;;  %p1572_p1 = scmp.lt.s32.totalorder %s1570_s23, %s1563_s29 }
  0x85   : > { %p1567_p7 = pneg %p1566_p5  ;;  %p1573_p2 = por %p1572_p1, %p1571_p12 }
  0x87   : > { %p1574_p13 = pnand %p1573_p2, %p1567_p7 }
  0x89   : > { %1577 = shalt.err (!%p1574_p13)
}
  0x8a   : > { %1372 = dma.hbm_to_vmem [thread:$0]  (!%p1903_p11), %s1899_s19, 256, %s1901_s22, %s1907_s20, %s1657_s25, %s1657_s25, %s1658_s26  }
  0x8b   : > { %p2081_p9 = scmp.ne.s32.totalorder %s2075_s17, 0 }
  0x8c   : > { %s1941_s30 = sand.u32 (!%p2081_p9), 1, %s1644_s10   ;;  %p2082_p0 = scmp.ne.s32.totalorder (!%p2081_p9), %s2072_s15, 0 }
  0x8d   : > { %352 = sbr.rel (%p2081_p9) target bundleno = 1255 (0x4e7), region = 56  ;;  %s978_s21 = sshll.u32 (!%p2081_p9), %s1941_s30, 4 }
  0x8e   : > { %s355_s24 = scalar_lea.sflag (!%p2081_p9), [#allocation3], %s1941_s30  ;;  %s1947_s9 = scalar_lea.vmem (!%p2081_p9), [#allocation2], %s978_s21 }
  0x94   : > { %1623 = dma.done.wait (%p2082_p0), %s355_s24, 256  }
  0x95   : > { %1625 = vsyncadd (%p2082_p0), %s355_s24, 4294967040  ;;  %p2083_p11 = scmp.eq.s32.totalorder %s1736_s13, 0 }
  0x97   : > { %1627 = dma.done.wait (%p2083_p11), [#allocation6], 4096   ;;  %p2084_p4 = pmov %p2083_p11 }
  0x99   : > { %1629 = vsyncadd (%p2084_p4), [#allocation6], 4294963200  ;;  %p2085_p8 = pmov %p2084_p4 }
  0x9a   : > { %p2086_p6 = pmov %p2084_p4 }
  0x9b   : > { %1631 = dma.done.wait (%p2085_p8), [#allocation9], 4096  }
  0x9c   : > { %1633 = vsyncadd (%p2086_p6), [#allocation9], 4294963200  ;;  %v413_v0 = vld [vmem:[#allocation5] sm:$0xff]  ;;  %v414_v1 = vld [vmem:[#allocation5 + $0x8] sm:$0xff]  ;;  %s995_s18 = sshll.u32 %s1736_s13, 8  ;;  %s408_s16 = scalar_lea.vmem [#allocation11], %s978_s21 }
  0x9d   : > { %v415_v2 = vld [vmem:[#allocation5 + $0x10] sm:$0xff]  ;;  %v1208_v3 = vpack.c.bf16 %v414_v1, %v413_v0  ;;  %v416_v4 = vld [vmem:[#allocation5 + $0x18] sm:$0xff]  ;;  %v417_v6 = vld [vmem:[#allocation5 + $0x20] sm:$0xff]  ;;  %s856_s23 = sshll.u32 %s408_s16, 4  ;;  %s2087_s15 = sld [smem:[#allocation18_spill]]  ;;  %s2006_s23 = int_to_ptr.vmem [resolvable:$true] %s856_s23 }
  0x9e   : > { %v1212_v5 = vpack.c.bf16 %v416_v4, %v415_v2  ;;  %v418_v7 = vld [vmem:[#allocation5 + $0x28] sm:$0xff]  ;;  %v419_v9 = vld [vmem:[#allocation5 + $0x30] sm:$0xff]  ;;  %v420_v10 = vld [vmem:[#allocation5 + $0x38] sm:$0xff]  ;;  %s843_s13 = scalar_lea.sflag [#allocation4], %s1941_s30  ;;  %s1578_s21 = scalar_lea.vmem %s2006_s23, 256 }
  0x9f   : > { %1209 = vmatprep.subr.bf16.mxu0 %v1208_v3  ;;  %v1216_v8 = vpack.c.bf16 %v418_v7, %v417_v6  ;;  %v1962_v11 = vld [vmem:[%s1947_s9] sm:$0xff]  ;;  %v518_v13 = vld [vmem:[#allocation7 + $0x8] sm:$0xff]  ;;  %v520_v16 = vld [vmem:[#allocation7 + $0x18] sm:$0xff]  ;;  %v1220_v20 = vpack.c.bf16 %v420_v10, %v419_v9  ;;  %p1579_p3 = scmp.ne.s32.totalorder %s2006_s23, %s1578_s21  ;;  %s1662_s25 = smov [#allocation11]  }
  0xa0   : > { %1211 = vmatpush3.bf16.msra.mxu0 %v1208_v3  ;;  %1100 = vmatprep.mubr.f32.mxu0 %v1962_v11  ;;  %v517_v12 = vld [vmem:[#allocation7] sm:$0xff]  ;;  %v519_v14 = vld [vmem:[#allocation7 + $0x10] sm:$0xff]  ;;  %v522_v19 = vld [vmem:[#allocation7 + $0x28] sm:$0xff]  ;;  %s1582_s26 = sshll.u32 %s1662_s25, 4  ;;  %s1583_s26 = int_to_ptr.vmem [resolvable:$false] %s1582_s26 }
  0xa1   : > { %1213 = vmatprep.subr.bf16.mxu0 %v1212_v5  ;;  %v1240_v15 = vpack.c.bf16 %v518_v13, %v517_v12  ;;  %v1244_v17 = vpack.c.bf16 %v520_v16, %v519_v14  ;;  %v521_v18 = vld [vmem:[#allocation7 + $0x20] sm:$0xff]  ;;  %v422_v22 = vld [vmem:[#allocation5 + $0x48] sm:$0xff]  ;;  %v523_v24 = vld [vmem:[#allocation7 + $0x30] sm:$0xff]  ;;  %p1580_p5 = pnand %p1579_p3, %p1886_p10  ;;  %s1584_s19 = scalar_lea.vmem %s1583_s26, 512 }
  0xa2   : > { %v421_v21 = vld [vmem:[#allocation5 + $0x40] sm:$0xff]  ;;  %v1248_v23 = vpack.c.bf16 %v522_v19, %v521_v18  ;;  %v524_v25 = vld [vmem:[#allocation7 + $0x38] sm:$0xff]  ;;  %v423_v27 = vld [vmem:[#allocation5 + $0x50] sm:$0xff]  ;;  %p1585_p12 = scmp.lt.s32.totalorder %s2006_s23, %s1583_s26  ;;  %p1586_p1 = scmp.lt.s32.totalorder %s1584_s19, %s1578_s21 }
  0xa3   : > { %1241 = vmatprep.subr.bf16.mxu1 %v1240_v15  ;;  %v1224_v26 = vpack.c.bf16 %v422_v22, %v421_v21  ;;  %v424_v28 = vld [vmem:[#allocation5 + $0x58] sm:$0xff]  ;;  %v1252_v29 = vpack.c.bf16 %v524_v25, %v523_v24  ;;  %v525_v30 = vld [vmem:[#allocation7 + $0x40] sm:$0xff]  ;;  %v526_v31 = vld [vmem:[#allocation7 + $0x48] sm:$0xff]  ;;  %s2004_s17 = scalar_lea.hbm %s2087_s15, %s995_s18  ;;  %p1581_p7 = pneg %p1580_p5 }
  0xa4   : > { %1215 = vmatpush3.bf16.msra.mxu0 %v1212_v5  ;;  %1243 = vmatpush3.bf16.msra.mxu1 %v1240_v15  ;;  %v1228_v32 = vpack.c.bf16 %v424_v28, %v423_v27  ;;  %v425_v33 = vld [vmem:[#allocation5 + $0x60] sm:$0xff]  ;;  %v426_v34 = vld [vmem:[#allocation5 + $0x68] sm:$0xff]  ;;  %v1256_v35 = vpack.c.bf16 %v526_v31, %v525_v30  ;;  %v527_v36 = vld [vmem:[#allocation7 + $0x50] sm:$0xff]  ;;  %p1587_p2 = por %p1586_p1, %p1585_p12 }
  0xa5   : > { %1217 = vmatprep.subr.bf16.mxu0 %v1216_v8  ;;  %1245 = vmatprep.subr.bf16.mxu1 %v1244_v17  ;;  %v528_v37 = vld [vmem:[#allocation7 + $0x58] sm:$0xff]  ;;  %v1232_v38 = vpack.c.bf16 %v426_v34, %v425_v33  ;;  %v427_v39 = vld [vmem:[#allocation5 + $0x70] sm:$0xff]  ;;  %v529_v44 = vld [vmem:[#allocation7 + $0x60] sm:$0xff] }
  0xa6   : > { %v428_v40 = vld [vmem:[#allocation5 + $0x78] sm:$0xff]  ;;  %v1260_v41 = vpack.c.bf16 %v528_v37, %v527_v36  ;;  %v530_v45 = vld [vmem:[#allocation7 + $0x68] sm:$0xff]  ;;  %v531_v47 = vld [vmem:[#allocation7 + $0x70] sm:$0xff]  ;;  %p1588_p13 = pnand %p1587_p2, %p1581_p7 }
  0xa7   : > { %v1236_v42 = vpack.c.bf16 %v428_v40, %v427_v39  ;;  %v412_v43 = vld [vmem:[%s1947_s9 + $0x8] sm:$0xff]  ;;  %v1264_v46 = vpack.c.bf16 %v530_v45, %v529_v44  ;;  %v621_v50 = vld [vmem:[#allocation8] sm:$0xff]  ;;  %v623_v52 = vld [vmem:[#allocation8 + $0x10] sm:$0xff]  ;;  %v722_v44 = vlaneseq }
  0xa8   : > { %1219 = vmatpush3.bf16.msra.mxu0 %v1216_v8  ;;  %1247 = vmatpush3.bf16.msra.mxu1 %v1244_v17  ;;  %v532_v48 = vld [vmem:[#allocation7 + $0x78] sm:$0xff]  ;;  %v622_v51 = vld [vmem:[#allocation8 + $0x8] sm:$0xff]  ;;  %v625_v56 = vld [vmem:[#allocation8 + $0x20] sm:$0xff] }
  0xa9   : > { %1221 = vmatprep.subr.bf16.mxu0 %v1220_v20  ;;  %1249 = vmatprep.subr.bf16.mxu1 %v1248_v23  ;;  %v1268_v49 = vpack.c.bf16 %v532_v48, %v531_v47  ;;  %v1272_v53 = vpack.c.bf16 %v622_v51, %v621_v50  ;;  %v624_v54 = vld [vmem:[#allocation8 + $0x18] sm:$0xff]  ;;  %v626_v57 = vld [vmem:[#allocation8 + $0x28] sm:$0xff]  ;;  %v627_v59 = vld [vmem:[#allocation8 + $0x30] sm:$0xff]  ;;  %v1661_v48 = vmov 0  }
  0xaa   : > { %v1276_v55 = vpack.c.bf16 %v624_v54, %v623_v52  ;;  %v1280_v58 = vpack.c.bf16 %v626_v57, %v625_v56  ;;  %v628_v60 = vld [vmem:[#allocation8 + $0x38] sm:$0xff]  ;;  %v629_v62 = vld [vmem:[#allocation8 + $0x40] sm:$0xff]  ;;  %v630_v63 = vld [vmem:[#allocation8 + $0x48] sm:$0xff] }
  0xab   : > { %v1284_v61 = vpack.c.bf16 %v628_v60, %v627_v59  ;;  %v1288_v0 = vpack.c.bf16 %v630_v63, %v629_v62  ;;  %v631_v1 = vld [vmem:[#allocation8 + $0x50] sm:$0xff]  ;;  %v632_v2 = vld [vmem:[#allocation8 + $0x58] sm:$0xff]  ;;  %v984_v4 = vld [vmem:[%s2056_s2] ss:$0 sm:$0xff] }
  0xac   : > { %1223 = vmatpush3.bf16.msra.mxu0 %v1220_v20  ;;  %1251 = vmatpush3.bf16.msra.mxu1 %v1248_v23  ;;  %v1292_v3 = vpack.c.bf16 %v632_v2, %v631_v1  ;;  %v633_v16 = vld [vmem:[#allocation8 + $0x60] sm:$0xff]  ;;  %v634_v17 = vld [vmem:[#allocation8 + $0x68] sm:$0xff]  ;;  %v635_v19 = vld [vmem:[#allocation8 + $0x70] sm:$0xff] }
  0xad   : > { %1225 = vmatprep.subr.bf16.mxu0 %v1224_v26  ;;  %1253 = vmatprep.subr.bf16.mxu1 %v1252_v29  ;;  %v1296_v18 = vpack.c.bf16 %v634_v17, %v633_v16  ;;  %v636_v20 = vld [vmem:[#allocation8 + $0x78] sm:$0xff]  ;;  %v985_v22 = vld [vmem:[%s2058_s4] ss:$0 sm:$0xff]  ;;  %v742_v33 = vld [vmem:[#allocation10 + $0x8] sm:$0xff] }
  0xae   : > { %v1300_v21 = vpack.c.bf16 %v636_v20, %v635_v19  ;;  %v743_v34 = vld [vmem:[#allocation10 + $0x10] sm:$0xff]  ;;  %v744_v36 = vld [vmem:[#allocation10 + $0x18] sm:$0xff]  ;;  %v746_v39 = vld [vmem:[#allocation10 + $0x28] sm:$0xff] }
  0xaf   : > { %v1308_v37 = vpack.c.bf16 %v744_v36, %v743_v34  ;;  %v719_v45 = vld [vmem:[%s2062_s8] sm:$0x1]  ;;  %v750_v59 = vld [vmem:[#allocation10 + $0x48] sm:$0xff]  ;;  %v752_v62 = vld [vmem:[#allocation10 + $0x58] sm:$0xff] }
  0xb0   : > { %1227 = vmatpush3.bf16.msra.mxu0 %v1224_v26  ;;  %1255 = vmatpush3.bf16.msra.mxu1 %v1252_v29  ;;  %vm720_vm0 = vcmp.gt.f32.partialorder %v719_v45, 0.5  ;;  %v986_v51 = vld [vmem:[%s2060_s6] ss:$0 sm:$0xff]  ;;  %v754_v1 = vld [vmem:[#allocation10 + $0x68] sm:$0xff] }
  0xb1   : > { %1229 = vmatprep.subr.bf16.mxu0 %v1228_v32  ;;  %1257 = vmatprep.subr.bf16.mxu1 %v1256_v35 }
  0xb4   : > { %1231 = vmatpush3.bf16.msra.mxu0 %v1228_v32  ;;  %1259 = vmatpush3.bf16.msra.mxu1 %v1256_v35  ;;  %v741_v32 = vld [vmem:[#allocation10] sm:$0xff] }
  0xb5   : > { %1233 = vmatprep.subr.bf16.mxu0 %v1232_v38  ;;  %1261 = vmatprep.subr.bf16.mxu1 %v1260_v41  ;;  %v1304_v35 = vpack.c.bf16 %v742_v33, %v741_v32 }
  0xb8   : > { %1235 = vmatpush3.bf16.msra.mxu0 %v1232_v38  ;;  %1263 = vmatpush3.bf16.msra.mxu1 %v1260_v41  ;;  %v745_v38 = vld [vmem:[#allocation10 + $0x20] sm:$0xff]  ;;  %v747_v41 = vld [vmem:[#allocation10 + $0x30] sm:$0xff] }
  0xb9   : > { %1237 = vmatprep.subr.bf16.mxu0 %v1236_v42  ;;  %1265 = vmatprep.subr.bf16.mxu1 %v1264_v46  ;;  %v1312_v40 = vpack.c.bf16 %v746_v39, %v745_v38 }
  0xbc   : > { %1239 = vmatpush3.bf16.msra.mxu0 %v1236_v42  ;;  %1267 = vmatpush3.bf16.msra.mxu1 %v1264_v46  ;;  %v748_v42 = vld [vmem:[#allocation10 + $0x38] sm:$0xff]  ;;  %v723_v46 = vshrl.u32 %v722_v44, 7 }
  0xbd   : > { %1269 = vmatprep.subr.bf16.mxu1 %v1268_v49  ;;  %1273 = vmatprep.subr.bf16.mxu0 %v1272_v53 }
  0xbe   : > { %v724_v47 = vsub.s32 0, %v723_v46 }
  0xbf   : > { %1101 = vmatmul.mubr.f32.vlgmr.msra.gmra.mrb[0].mxu0 %v412_v43 }
  0xc0   : > { %1271 = vmatpush3.bf16.msra.mxu1 %v1268_v49  ;;  %1275 = vmatpush3.bf16.msra.mxu0 %v1272_v53  ;;  %v721_v49 = vsel %vm720_vm0, 1, %v1661_v48 }
  0xc1   : > { %1277 = vmatprep.subr.bf16.mxu0 %v1276_v55  ;;  %1305 = vmatprep.subr.bf16.mxu1 %v1304_v35  ;;  %v1976_v50 = vrot.slane %v721_v49, %v724_v47 }
  0xc3   : > { %vm726_vm1 = vcmp.eq.s32.totalorder %v1976_v50, 1 }
  0xc4   : > { %1279 = vmatpush3.bf16.msra.mxu0 %v1276_v55 }
  0xc5   : > { %1281 = vmatprep.subr.bf16.mxu0 %v1280_v58 }
  0xc8   : > { %1283 = vmatpush3.bf16.msra.mxu0 %v1280_v58  ;;  %v749_v58 = vld [vmem:[#allocation10 + $0x40] sm:$0xff] }
  0xc9   : > { %1285 = vmatprep.subr.bf16.mxu0 %v1284_v61  ;;  %v1320_v60 = vpack.c.bf16 %v750_v59, %v749_v58 }
  0xcc   : > { %1287 = vmatpush3.bf16.msra.mxu0 %v1284_v61  ;;  %v751_v61 = vld [vmem:[#allocation10 + $0x50] sm:$0xff] }
  0xcd   : > { %1289 = vmatprep.subr.bf16.mxu0 %v1288_v0  ;;  %v1324_v63 = vpack.c.bf16 %v752_v62, %v751_v61 }
  0xd0   : > { %1291 = vmatpush3.bf16.msra.mxu0 %v1288_v0  ;;  %v753_v0 = vld [vmem:[#allocation10 + $0x60] sm:$0xff] }
  0xd1   : > { %1293 = vmatprep.subr.bf16.mxu0 %v1292_v3  ;;  %v1328_v2 = vpack.c.bf16 %v754_v1, %v753_v0 }
  0xd4   : > { %1295 = vmatpush3.bf16.msra.mxu0 %v1292_v3  ;;  %v755_v3 = vld [vmem:[#allocation10 + $0x70] sm:$0xff] }
  0xd5   : > { %1297 = vmatprep.subr.bf16.mxu0 %v1296_v18 }
  0xd8   : > { %1299 = vmatpush3.bf16.msra.mxu0 %v1296_v18 }
  0xd9   : > { %1301 = vmatprep.subr.bf16.mxu0 %v1300_v21 }
  0xdc   : > { %1303 = vmatpush3.bf16.msra.mxu0 %v1300_v21 }
 0x192   : > { %v1102_v5 = vpop.f32.mrb[0].mxu0 }
 0x193   : > { %v508_v6 = vadd.f32 %v1102_v5, %v984_v4  ;;  %v502_v7 = vpop.f32.mrb[1].mxu0 }
 0x194   : > { %v503_v8 = vadd.f32 %v984_v4, %v502_v7  ;;  %v756_v4 = vld [vmem:[#allocation10 + $0x78] sm:$0xff] }
 0x195   : > { %v512_v9 = vmul.f32 0.01, %v508_v6  ;;  %v1332_v5 = vpack.c.bf16 %v756_v4, %v755_v3 }
 0x196   : > { %v511_v10 = vmul.f32 0.01, %v503_v8 }
 0x197   : > { %v514_v12 = vmax.f32 %v508_v6, %v512_v9 }
 0x198   : > { %v513_v13 = vmax.f32 %v503_v8, %v511_v10 }
 0x199   : > { %v516_v15 = vadd.f32 %v514_v12, %v412_v43  ;;  %v1316_v43 = vpack.c.bf16 %v748_v42, %v747_v41 }
 0x19a   : > { %v515_v14 = vadd.f32 %v513_v13, %v1962_v11 }
 0x19c   : > { %1135 = vmatprep.mubr.f32.mxu1 %v515_v14 }
 0x19d   : > { %1136 = vmatmul.mubr.f32.vlgmr.msra.gmra.mrb[0].mxu1 %v516_v15 }
 0x19e   : > { %1307 = vmatpush3.bf16.msra.mxu1 %v1304_v35 }
 0x19f   : > { %1309 = vmatprep.subr.bf16.mxu1 %v1308_v37 }
 0x1a2   : > { %1311 = vmatpush3.bf16.msra.mxu1 %v1308_v37 }
 0x1a3   : > { %1313 = vmatprep.subr.bf16.mxu1 %v1312_v40 }
 0x1a6   : > { %1315 = vmatpush3.bf16.msra.mxu1 %v1312_v40 }
 0x1a7   : > { %1317 = vmatprep.subr.bf16.mxu1 %v1316_v43 }
 0x1aa   : > { %1319 = vmatpush3.bf16.msra.mxu1 %v1316_v43 }
 0x1ab   : > { %1321 = vmatprep.subr.bf16.mxu1 %v1320_v60 }
 0x1ae   : > { %1323 = vmatpush3.bf16.msra.mxu1 %v1320_v60 }
 0x1af   : > { %1325 = vmatprep.subr.bf16.mxu1 %v1324_v63 }
 0x1b2   : > { %1327 = vmatpush3.bf16.msra.mxu1 %v1324_v63 }
 0x1b3   : > { %1329 = vmatprep.subr.bf16.mxu1 %v1328_v2 }
 0x1b6   : > { %1331 = vmatpush3.bf16.msra.mxu1 %v1328_v2 }
 0x1b7   : > { %1333 = vmatprep.subr.bf16.mxu1 %v1332_v5 }
 0x1ba   : > { %1335 = vmatpush3.bf16.msra.mxu1 %v1332_v5 }
 0x270   : > { %v1137_v23 = vpop.f32.mrb[0].mxu1 }
 0x271   : > { %v612_v24 = vadd.f32 %v1137_v23, %v985_v22  ;;  %v606_v11 = vpop.f32.mrb[1].mxu1 }
 0x272   : > { %v607_v25 = vadd.f32 %v985_v22, %v606_v11 }
 0x273   : > { %v616_v26 = vmul.f32 0.01, %v612_v24 }
 0x274   : > { %v615_v27 = vmul.f32 0.01, %v607_v25 }
 0x275   : > { %v618_v28 = vmax.f32 %v612_v24, %v616_v26 }
 0x276   : > { %v617_v29 = vmax.f32 %v607_v25, %v615_v27 }
 0x277   : > { %v620_v31 = vadd.f32 %v618_v28, %v516_v15 }
 0x278   : > { %v619_v30 = vadd.f32 %v617_v29, %v515_v14 }
 0x27a   : > { %1170 = vmatprep.mubr.f32.mxu0 %v619_v30 }
 0x27b   : > { %1171 = vmatmul.mubr.f32.vlgmr.msra.gmra.mrb[2].mxu0 %v620_v31 }
 0x34e   : > { %v1172_v52 = vpop.f32.mrb[2].mxu0 }
 0x34f   : > { %v710_v53 = vpop.f32.mrb[3].mxu0  ;;  %v716_v55 = vadd.f32 %v1172_v52, %v986_v51 }
 0x350   : > { %v711_v54 = vadd.f32 %v986_v51, %v710_v53 }
 0x351   : > { %v728_v57 = vsel %vm726_vm1, %v716_v55, -inf }
 0x352   : > { %v727_v56 = vsel %vm726_vm1, %v711_v54, -inf }
 0x353   : > { %729 = vmax.xlane.f32.xlu0 %v727_v56 }
 0x357   : > { %731 = vmax.xlane.f32.xlu0 %v728_v57 }
 0x3e0   : > { %v730_v6 = vpop.xlane.xlu0 %729 }
 0x3e1   : > { %v733_v7 = vsub.f32 %v711_v54, %v730_v6 }
 0x3e3   : > { %v735_v8 = vmul.f32 1.442695, %v733_v7 }
 0x3e4   : > { %v732_v9 = vpop.xlane.xlu0 %731 }
 0x3e5   : > { %1428 = vpow2.f32 %v735_v8  ;;  %v734_v10 = vsub.f32 %v716_v55, %v732_v9 }
 0x3e7   : > { %v737_v12 = vmul.f32 1.442695, %v734_v10 }
 0x3e9   : > { %1430 = vpow2.f32 %v737_v12 }
 0x3ef   : > { %v1429_v13 = vpop.eup %1428 }
 0x3f0   : > { %1205 = vmatprep.mubr.msk.f32.mxu1 %vm726_vm1, %v1429_v13  ;;  %v739_v22 = vsel %vm726_vm1, %v1429_v13, 0.0 }
 0x3f3   : > { %v1431_v14 = vpop.eup %1430 }
 0x3f4   : > { %1206 = vmatmul.mubr.msk.f32.vlgmr.msra.gmra.mrb[2].mxu1 %vm726_vm1, %v1431_v14  ;;  %v740_v20 = vsel %vm726_vm1, %v1431_v14, 0.0 }
 0x4c7   : > { %v1207_v15 = vpop.f32.mrb[2].mxu1 }
 0x4c8   : > { %v833_v16 = vsel %vm726_vm1, %v1207_v15, 1.0  ;;  %v823_v17 = vpop.f32.mrb[3].mxu1 }
 0x4c9   : > { %1432 = vrcp.f32 %v833_v16  ;;  %v832_v18 = vsel %vm726_vm1, %v823_v17, 1.0 }
 0x4ca   : > { %1434 = vrcp.f32 %v832_v18 }
 0x4d3   : > { %v1433_v19 = vpop.eup %1432 }
 0x4d4   : > { %v1435_v21 = vpop.eup %1434  ;;  %v837_v23 = vmul.f32 %v1433_v19, %v740_v20 }
 0x4d5   : > { %v836_v24 = vmul.f32 %v1435_v21, %v739_v22 }
 0x4d6   : > { %v839_v11 = vsel %vm726_vm1, %v837_v23, %v716_v55 }
 0x4d7   : > { %v838_v25 = vsel %vm726_vm1, %v836_v24, %v711_v54  ;;  %841 = vst [vmem:[%s408_s16 + $0x8] sm:$0xff] %v839_v11 }
 0x4d8   : > { %840 = vst [vmem:[%s408_s16] sm:$0xff] %v838_v25 }
 0x4d9   : > { %1591 = shalt.err (!%p1588_p13)
}
 0x4da   : > { %s1592_s22 = scalar_lea.hbm %s2004_s17, 256  ;;  %s1596_s18 = scalar_lea.hbm %s2087_s15, 512 }
 0x4db   : > { %p1593_p9 = scmp.ne.s32.totalorder %s2004_s17, %s1592_s22  ;;  %p1597_p4 = scmp.lt.u32.totalorder %s2004_s17, %s2087_s15 }
 0x4dc   : > { %p1598_p8 = scmp.lt.u32.totalorder %s1596_s18, %s1592_s22  ;;  %p1600_p3 = scmp.lt.u32.totalorder %s1592_s22, %s2004_s17 }
 0x4dd   : > { %p1594_p0 = pnand %p1593_p9, %p1886_p10 }
 0x4de   : > { %p1599_p6 = por %p1598_p8, %p1597_p4 }
 0x4df   : > { %p1595_p11 = pneg %p1594_p0 }
 0x4e0   : > { %p1601_p5 = por %p1600_p3, %p1599_p6 }
 0x4e2   : > { %p1602_p7 = pnand %p1601_p5, %p1595_p11 }
 0x4e4   : > { %1605 = shalt.err (!%p1602_p7)
}
 0x4e5   : > { %s1663_s9 = smov 128   ;;  %s1664_s21 = smov 8  }
 0x4e6   : > { %1354 = dma.vmem_to_hbm [thread:$0]  (%p1886_p10), %s2006_s23, 256, %s2004_s17, %s843_s13, %s1663_s9, %s1663_s9, %s1664_s21  }
 0x4e7 PF: > { %s2088_s25 = sld [smem:[#allocation16_spill]]  ;;  %s2089_s26 = sld [smem:[#allocation17_spill]] }
 0x4e8   : > { %p2091_p1 = scmp.ge.s32.totalorder %s1652_s12, 2 }
 0x4ed   : > { %s871_s19 = sand.u32 1, %s2088_s25   ;;  %p2090_p12 = scmp.ne.s32.totalorder %s2089_s26, 0 }
 0x4ee   : > { %s872_s22 = scalar_lea.sflag [#allocation4], %s871_s19 }
 0x4ef   : > { %p1374_p2 = pnand %p2091_p1, %p2090_p12 }
 0x4f1   : > { %1635 = dma.done.wait (!%p1374_p2), %s872_s22, 256  }
 0x4f2   : > { %1637 = vsyncadd (!%p1374_p2), %s872_s22, 4294967040  ;;  %p24_p13 = scmp.ge.s32.totalorder %s1876_s14, 4   ;;  %s2092_s30 = smov %s1644_s10 }
 0x4f3   : > { %s2093_s10 = smov %s1648_s11  ;;  %s2094_s11 = smov %s1892_s28 }
 0x4f4   : > { %s2095_s12 = smov %s1876_s14  ;;  %26 = sbr.rel (!%p24_p13) target bundleno = 9 (0x9), region = 117 }
 0x4fb   :  { %877 = vsyncpa [#allocation3], 1 }
 0x4fc   :  { %879 = vsyncpa [#allocation3 + $0x1], 1 }
 0x4fd   :  { %880 = vsyncpa [#allocation6], 1 }
 0x4fe   :  { %881 = vsyncpa [#allocation9], 1 }
 0x4ff   :  { %882 = vsyncpa [#allocation4], 1 }
 0x500   :  { %884 = vsyncpa [#allocation4 + $0x1], 1 }

</bundles_post_ra>
